<compile_context>
chip_gen: v7x
topology: tpu7x:2x2x1
jax: 0.10.0
libtpu: 0.0.40
codegen_flags: <defaults>
</compile_context>

<pallas_src>
import functools

import jax
import jax.numpy as jnp
import numpy as np
from jax.experimental import pallas as pl
from jax.experimental.pallas import tpu as pltpu

# ------------------------- synthetic tree config -------------------------
DEPTH = 3                       # complete binary tree depth
NUM_INTERNAL = 2 ** DEPTH - 1   # 7 internal nodes
NUM_LEAVES = 2 ** DEPTH         # 8 leaves
INPUT_SIZE = 8                  # == module's input_size (number of features)
BATCH = 4096                    # number of samples
TILE_N = 1024                   # samples per grid step (multiple of 128 lanes)


# ------------------------------ kernel -----------------------------------
def tree_kernel(feature_idx, thresholds, leaf_probs, x_ref, out_ref):
    """Route every sample in this tile through the tree; emit P(class=1).

    feature_idx / thresholds / leaf_probs : Python tuples (compile-time consts)
    x_ref   : (F, TILE_N) f32  samples, lane-dense (samples on last axis)
    out_ref : (1, TILE_N) f32  per-sample class-1 probability
    """
    n_internal = len(thresholds)

    # Recursive where-select traversal of the complete tree.  Each internal
    # node contributes one static sublane read, one scalar compare and one
    # select — all full-vreg VPU elementwise ops; no MXU, no XLU, no int
    # bookkeeping.
    def route(node):
        if node >= n_internal:
            # leaf: scalar constant, broadcast by the enclosing jnp.where
            return jnp.float32(leaf_probs[node - n_internal])
        f = int(feature_idx[node])
        thr = float(thresholds[node])
        row = x_ref[pl.ds(f, 1), :]            # (1, TILE_N) static sublane read
        go_right = row > thr                   # strict '>': '<=' goes left
        return jnp.where(go_right, route(2 * node + 2), route(2 * node + 1))

    out_ref[...] = route(0).astype(jnp.float32)


# ------------------------------ wrapper -----------------------------------
def decision_tree_predict_proba(x, feature_idx, thresholds, leaf_probs):
    """Pallas-backed DecisionTree.forward(x) -> (N,) class-1 probabilities."""
    x = jnp.asarray(x, jnp.float32)
    n, f = x.shape

    # Tree tables are tiny and fixed at build time: bake them in as constants
    # (removes the table DMAs and traced scatter/one-hot construction).
    feature_idx = tuple(int(v) for v in np.asarray(feature_idx))
    thresholds = tuple(float(v) for v in np.asarray(thresholds, np.float32))
    leaf_probs = tuple(float(v) for v in np.asarray(leaf_probs, np.float32))

    # Lane-dense layout: samples on the last (lane) axis.
    tile_n = min(TILE_N, pl.cdiv(n, 128) * 128)
    n_pad = pl.cdiv(n, tile_n) * tile_n
    xt = x.T                                            # (F, N)
    if n_pad != n:
        xt = jnp.pad(xt, ((0, 0), (0, n_pad - n)))      # pad rides along, sliced off

    kernel = functools.partial(tree_kernel, feature_idx, thresholds, leaf_probs)
    out = pl.pallas_call(
        kernel,
        out_shape=jax.ShapeDtypeStruct((1, n_pad), jnp.float32),
        grid=(n_pad // tile_n,),
        in_specs=[pl.BlockSpec((f, tile_n), lambda i: (0, i))],
        out_specs=pl.BlockSpec((1, tile_n), lambda i: (0, i)),
        compiler_params=pltpu.CompilerParams(
            dimension_semantics=("parallel",)),
    )(xt)
    return out[0, :n]                                    # lane-dense slab -> (N,)


# --------------------------- pure-numpy reference ----------------------------
def reference_predict_proba(x, feature_idx, thresholds, leaf_probs, depth):
    x = np.asarray(x, np.float32)
    feature_idx = np.asarray(feature_idx)
    thresholds = np.asarray(thresholds, np.float32)
    leaf_probs = np.asarray(leaf_probs, np.float32)
    n = x.shape[0]
    ni = thresholds.shape[0]
    out = np.zeros((n,), np.float32)
    for s in range(n):
        node = 0
        for _ in range(depth):
            feat = feature_idx[node]
            node = 2 * node + 1 + int(x[s, feat] > thresholds[node])
        out[s] = leaf_probs[node - ni]
    return out


# -------------------------------- main -------------------------------------
if __name__ == "__main__":
    key = jax.random.PRNGKey(0)
    k_x, k_thr, k_leaf = jax.random.split(key, 3)

    # deterministic synthetic "fitted" tree parameters
    # TODO(synk): real sklearn tree structure is learned by .fit(); no checkpoint
    # is available, so a synthetic complete tree stands in for the fitted one.
    feature_idx = jnp.arange(NUM_INTERNAL, dtype=jnp.int32) % INPUT_SIZE
    thresholds = jax.random.normal(k_thr, (NUM_INTERNAL,), jnp.float32) * 0.5
    leaf_probs = jax.random.uniform(k_leaf, (NUM_LEAVES,), jnp.float32)

    # inputs: (batch, input_size)
    x = jax.random.normal(k_x, (BATCH, INPUT_SIZE), jnp.float32)

    probs = decision_tree_predict_proba(x, feature_idx, thresholds, leaf_probs)
    probs = jax.block_until_ready(probs)

    ref = reference_predict_proba(x, feature_idx, thresholds, leaf_probs, DEPTH)
    assert probs.shape == (BATCH,)
    assert np.allclose(np.asarray(probs), ref, atol=1e-6), "mismatch vs reference"

    print("KERNEL_OK")
</pallas_src>

<mosaic_0001>
module attributes {stable_mosaic.version = 11 : i64} {
  func.func @tree_kernel(%arg0: i32, %arg1: memref<8x1024xf32, #tpu.memory_space<vmem>>, %arg2: memref<1x1024xf32, #tpu.memory_space<vmem>>) attributes {dimension_semantics = [#tpu.dimension_semantics<parallel>], iteration_bounds = array<i64: 4>, scalar_prefetch = 0 : i64, scratch_operands = 0 : i64, tpu.core_type = #tpu.core_type<tc>, window_params = [{transform_indices = @transform_0, window_bounds = array<i64: 8, 1024>}, {transform_indices = @transform_1, window_bounds = array<i64: 1, 1024>}]} {
    %c0 = arith.constant 0 : index
    %c0_0 = arith.constant 0 : index
    %0 = vector.load %arg1[%c0, %c0_0] : memref<8x1024xf32, #tpu.memory_space<vmem>>, vector<1x1024xf32>
    %cst = arith.constant -1.22122788 : f32
    %1 = vector.broadcast %cst : f32 to vector<1x1024xf32>
    %2 = arith.cmpf ogt, %0, %1 : vector<1x1024xf32>
    %c2 = arith.constant 2 : index
    %c0_1 = arith.constant 0 : index
    %3 = vector.load %arg1[%c2, %c0_1] : memref<8x1024xf32, #tpu.memory_space<vmem>>, vector<1x1024xf32>
    %cst_2 = arith.constant 0.102772117 : f32
    %4 = vector.broadcast %cst_2 : f32 to vector<1x1024xf32>
    %5 = arith.cmpf ogt, %3, %4 : vector<1x1024xf32>
    %c6 = arith.constant 6 : index
    %c0_3 = arith.constant 0 : index
    %6 = vector.load %arg1[%c6, %c0_3] : memref<8x1024xf32, #tpu.memory_space<vmem>>, vector<1x1024xf32>
    %cst_4 = arith.constant -0.574109793 : f32
    %7 = vector.broadcast %cst_4 : f32 to vector<1x1024xf32>
    %8 = arith.cmpf ogt, %6, %7 : vector<1x1024xf32>
    %cst_5 = arith.constant 0.225641131 : f32
    %cst_6 = arith.constant 0.717204332 : f32
    %9 = vector.broadcast %cst_5 : f32 to vector<1x1024xf32>
    %10 = vector.broadcast %cst_6 : f32 to vector<1x1024xf32>
    %11 = arith.select %8, %9, %10 : vector<1x1024xi1>, vector<1x1024xf32>
    %c5 = arith.constant 5 : index
    %c0_7 = arith.constant 0 : index
    %12 = vector.load %arg1[%c5, %c0_7] : memref<8x1024xf32, #tpu.memory_space<vmem>>, vector<1x1024xf32>
    %cst_8 = arith.constant -0.589275897 : f32
    %13 = vector.broadcast %cst_8 : f32 to vector<1x1024xf32>
    %14 = arith.cmpf ogt, %12, %13 : vector<1x1024xf32>
    %cst_9 = arith.constant 0.507535219 : f32
    %cst_10 = arith.constant 0.648376703 : f32
    %15 = vector.broadcast %cst_9 : f32 to vector<1x1024xf32>
    %16 = vector.broadcast %cst_10 : f32 to vector<1x1024xf32>
    %17 = arith.select %14, %15, %16 : vector<1x1024xi1>, vector<1x1024xf32>
    %18 = arith.select %5, %11, %17 : vector<1x1024xi1>, vector<1x1024xf32>
    %c1 = arith.constant 1 : index
    %c0_11 = arith.constant 0 : index
    %19 = vector.load %arg1[%c1, %c0_11] : memref<8x1024xf32, #tpu.memory_space<vmem>>, vector<1x1024xf32>
    %cst_12 = arith.constant -1.01784027 : f32
    %20 = vector.broadcast %cst_12 : f32 to vector<1x1024xf32>
    %21 = arith.cmpf ogt, %19, %20 : vector<1x1024xf32>
    %c4 = arith.constant 4 : index
    %c0_13 = arith.constant 0 : index
    %22 = vector.load %arg1[%c4, %c0_13] : memref<8x1024xf32, #tpu.memory_space<vmem>>, vector<1x1024xf32>
    %cst_14 = arith.constant -0.380987018 : f32
    %23 = vector.broadcast %cst_14 : f32 to vector<1x1024xf32>
    %24 = arith.cmpf ogt, %22, %23 : vector<1x1024xf32>
    %cst_15 = arith.constant 0.220091105 : f32
    %cst_16 = arith.constant 0.341047645 : f32
    %25 = vector.broadcast %cst_15 : f32 to vector<1x1024xf32>
    %26 = vector.broadcast %cst_16 : f32 to vector<1x1024xf32>
    %27 = arith.select %24, %25, %26 : vector<1x1024xi1>, vector<1x1024xf32>
    %c3 = arith.constant 3 : index
    %c0_17 = arith.constant 0 : index
    %28 = vector.load %arg1[%c3, %c0_17] : memref<8x1024xf32, #tpu.memory_space<vmem>>, vector<1x1024xf32>
    %cst_18 = arith.constant -0.176775098 : f32
    %29 = vector.broadcast %cst_18 : f32 to vector<1x1024xf32>
    %30 = arith.cmpf ogt, %28, %29 : vector<1x1024xf32>
    %cst_19 = arith.constant 0.912292838 : f32
    %cst_20 = arith.constant 0.902449488 : f32
    %31 = vector.broadcast %cst_19 : f32 to vector<1x1024xf32>
    %32 = vector.broadcast %cst_20 : f32 to vector<1x1024xf32>
    %33 = arith.select %30, %31, %32 : vector<1x1024xi1>, vector<1x1024xf32>
    %34 = arith.select %21, %27, %33 : vector<1x1024xi1>, vector<1x1024xf32>
    %35 = arith.select %2, %18, %34 : vector<1x1024xi1>, vector<1x1024xf32>
    %c0_21 = arith.constant 0 : index
    %c0_22 = arith.constant 0 : index
    %36 = vector.load %arg2[%c0_21, %c0_22] : memref<1x1024xf32, #tpu.memory_space<vmem>>, vector<1x1024xf32>
    tpu.vector_store %arg2[%c0_21, %c0_22], %35 {strides = array<i32>} : memref<1x1024xf32, #tpu.memory_space<vmem>>, vector<1x1024xf32>,
    return
  }
  func.func @transform_0(%arg0: i32) -> (i32, i32) {
    %c0_i32 = arith.constant 0 : i32
    %c0_i32_0 = arith.constant 0 : i32
    return %c0_i32, %arg0 : i32, i32
  }
  func.func @transform_1(%arg0: i32) -> (i32, i32) {
    %c0_i32 = arith.constant 0 : i32
    %c0_i32_0 = arith.constant 0 : i32
    return %c0_i32, %arg0 : i32, i32
  }
}

</mosaic_0001>

<bundles_post_ra>
// kernel: tpu_custom_call.1
= control target key start
LH: loop header
LB: loop body
LE: loop exit
PB: predicated region body
PF: predicated region fallthrough
CT: control target
= control target key end

     0   :  { %6 = vsyncpa [#allocation3], 0  ;;  %s620_s0 = inlined_call_operand.hbm [shape: f32[8,4096], index: 0, kind: input, shape index: {}]   ;;  %s621_s1 = inlined_call_operand.hbm [shape: f32[1,4096], index: 1, kind: output, shape index: {}]  }
   0x1   :  { %8 = vsyncpa [#allocation3 + $0x1], 0 }
   0x2   :  { %9 = vsyncpa [#allocation4], 0 }
   0x3   :  { %11 = vsyncpa [#allocation4 + $0x1], 0  ;;  %s454_s6 = smov 0   ;;  %s456_s7 = smov 0  }
   0x4   :  { %s458_s8 = smov 0   ;;  %s460_s9 = smov 0  }
   0x5 LB: > { %s475_s10 = sadd.s32 4294967295, %s436_s9   ;;  %s262_s11 = sadd.s32 4294967294, %s436_s9   ;;  %s436_s9 = sphi %s460_s9, %s637_s9   ;;  %s432_s8 = sphi %s458_s8, %s636_s8   ;;  %s428_s7 = sphi %s456_s7, %s635_s7   ;;  %s424_s6 = sphi %s454_s6, %s634_s6  }
   0x6   : > { %s479_s12 = sadd.s32 1, %s436_s9   ;;  %s24_s13 = sadd.s32 1, %s432_s8 }
   0x7   : > { %s21_s14 = ssub.s32 %s436_s9, %s479_s12  ;;  %p31_p0 = scmp.ne.s32.totalorder %s432_s8, %s428_s7 }
   0x8   : > { %p22_p1 = scmp.eq.s32.totalorder %s21_s14, 0  ;;  %p32_p2 = scmp.eq.s32.totalorder %s436_s9, 0 }
   0x9   : > { %p37_p3 = scmp.ne.s32.totalorder %s428_s7, %s424_s6  ;;  %p38_p4 = scmp.eq.s32.totalorder %s475_s10, 0 }
   0xa   : > { %s491_s15 = scalar_select %p22_p1, %s432_s8, %s24_s13  }
   0xb   : > { %p493_p5 = por %p32_p2, %p31_p0  ;;  %p497_p6 = por %p38_p4, %p37_p3 }
   0xc   : > { %p61_p7 = scmp.eq.s32.totalorder %s475_s10, 3  ;;  %p67_p8 = scmp.eq.s32.totalorder %s262_s11, 3 }
   0xd   : > { %p302_p9 = scmp.lt.s32.totalorder %s436_s9, 4  ;;  %s87_s20 = sand.u32 1, %s432_s8  }
   0xe   : > { %p503_p10 = por %p61_p7, %p31_p0  ;;  %p507_p11 = por %p67_p8, %p37_p3 }
   0xf   : > { %s288_s21 = sshll.u32 %s436_s9, 10  ;;  %s265_s22 = sshll.u32 %s87_s20, 6 }
  0x10   : > { %s625_s18 = scalar_select %p503_p10, 1, 0 }
  0x11   : > { %s626_s19 = scalar_select %p507_p11, 1, 0 }
  0x12   : > { %s516_s25 = scalar_lea.hbm %s620_s0, %s288_s21  ;;  %s91_s26 = scalar_lea.vmem [#allocation2], %s265_s22 }
  0x13   : > { %s99_s27 = sshll.u32 %s91_s26, 4  ;;  %p520_p12 = pnand %p302_p9, %p493_p5  ;;  %s524_s27 = int_to_ptr.vmem [resolvable:$true] %s99_s27 }
  0x14   : > { %s88_s29 = scalar_lea.sflag [#allocation3], %s87_s20  ;;  %s340_s30 = scalar_lea.hbm %s516_s25, 1024 }
  0x15   : > { %p341_p1 = scmp.ne.s32.totalorder %s516_s25, %s340_s30  ;;  %p342_p2 = pneg %p520_p12 }
  0x16   : > { %s345_s4 = scalar_lea.hbm %s620_s0, 4096  ;;  %p346_p5 = scmp.lt.u32.totalorder %s516_s25, %s620_s0 }
  0x17   : > { %p343_p3 = pnand %p342_p2, %p341_p1  ;;  %p347_p7 = scmp.lt.u32.totalorder %s345_s4, %s340_s30 }
  0x18   : > { %p349_p9 = scmp.lt.u32.totalorder %s340_s30, %s516_s25 }
  0x19   : > { %p344_p4 = pneg %p343_p3  ;;  %p348_p8 = por %p347_p7, %p346_p5 }
  0x1b   : > { %p350_p13 = por %p349_p9, %p348_p8 }
  0x1d   : > { %p351_p0 = pnand %p350_p13, %p344_p4 }
  0x1f   : > { %354 = shalt.err (!%p351_p0)
}
  0x20   : > { %s355_s13 = scalar_lea.vmem %s524_s27, 1024  ;;  %s438_s14 = smov [#allocation2]  }
  0x21   : > { %p356_p1 = scmp.ne.s32.totalorder %s524_s27, %s355_s13  ;;  %s360_s16 = sshll.u32 %s438_s14, 4  ;;  %s361_s16 = int_to_ptr.vmem [resolvable:$false] %s360_s16 }
  0x22   : > { %s362_s20 = scalar_lea.vmem %s361_s16, 2048  ;;  %p363_p10 = scmp.lt.s32.totalorder %s524_s27, %s361_s16 }
  0x23   : > { %p358_p3 = pnand %p356_p1, %p342_p2  ;;  %p364_p5 = scmp.lt.s32.totalorder %s362_s20, %s355_s13 }
  0x25   : > { %p359_p11 = pneg %p358_p3  ;;  %p365_p7 = por %p364_p5, %p363_p10 }
  0x27   : > { %p366_p8 = pnand %p365_p7, %p359_p11 }
  0x29   : > { %369 = shalt.err (!%p366_p8)
}
  0x2a   : > { %297 = dma.hbm_to_vmem [thread:$0]  (!%p520_p12), %s516_s25, 1024, %s524_s27, %s88_s29  }
  0x2b   : > { %p628_p13 = scmp.lt.s32.totalorder %s436_s9, 5  ;;  %p629_p0 = scmp.ge.s32.totalorder %s436_s9, 1 }
  0x2d   : > { %p105_p2 = pnand %p629_p0, %p628_p13 }
  0x2e   : > { %s558_s21 = sand.u32 (!%p105_p2), 1, %s428_s7  }
  0x2f   : > { %108 = sbr.rel (%p105_p2) target bundleno = 89 (0x59), region = 24  ;;  %s269_s22 = sshll.u32 (!%p105_p2), %s558_s21, 6 }
  0x30   : > { %s111_s23 = scalar_lea.sflag (!%p105_p2), [#allocation3], %s558_s21  ;;  %s114_s24 = scalar_lea.vmem (!%p105_p2), [#allocation2], %s269_s22 }
  0x36   : > { %415 = dma.done.wait (%p497_p6), %s111_s23, 1024  }
  0x37   : > { %417 = vsyncadd (%p497_p6), %s111_s23, 4294966272  ;;  %v271_v0 = vld [vmem:[%s114_s24 + $0x2] ss:$8 sm:$0xf]  ;;  %s270_s25 = sshll.u32 %s558_s21, 3  ;;  %s289_s27 = sshll.u32 %s475_s10, 7 }
  0x38   : > { %v272_v1 = vld [vmem:[%s114_s24 + $0x2] ss:$8 sm:$0xf0]  ;;  %v273_v2 = vld [vmem:[%s114_s24 + $0x6] ss:$8 sm:$0xf]  ;;  %s579_s30 = scalar_lea.hbm %s621_s1, %s289_s27 }
  0x39   : > { %v274_v3 = vld [vmem:[%s114_s24 + $0x6] ss:$8 sm:$0xf0]  ;;  %v275_v5 = vld [vmem:[%s114_s24 + $0x5] ss:$8 sm:$0xf]  ;;  %v142_v7 = vor.u32 %v272_v1, %v271_v0 }
  0x3a   : > { %v147_v4 = vor.u32 %v274_v3, %v273_v2  ;;  %v135_v6 = vld [vmem:[%s114_s24] ss:$8 sm:$0xf]  ;;  %v276_v8 = vld [vmem:[%s114_s24 + $0x5] ss:$8 sm:$0xf0] }
  0x3b   : > { %v136_v9 = vld [vmem:[%s114_s24] ss:$8 sm:$0xf0]  ;;  %v153_v10 = vor.u32 %v276_v8, %v275_v5  ;;  %v277_v11 = vld [vmem:[%s114_s24 + $0x1] ss:$8 sm:$0xf] }
  0x3c   : > { %vm148_vm0 = vcmp.gt.f32.partialorder %v147_v4, -0.5741098  ;;  %v278_v12 = vld [vmem:[%s114_s24 + $0x1] ss:$8 sm:$0xf0]  ;;  %v137_v17 = vor.u32 %v136_v9, %v135_v6  ;;  %s132_s17 = scalar_lea.vmem [#allocation5], %s270_s25 }
  0x3d   : > { %vm154_vm1 = vcmp.gt.f32.partialorder %v153_v10, -0.5892759  ;;  %v279_v13 = vld [vmem:[%s114_s24 + $0x4] ss:$8 sm:$0xf]  ;;  %v160_v15 = vor.u32 %v278_v12, %v277_v11  ;;  %s192_s26 = sshll.u32 %s132_s17, 4  ;;  %s574_s26 = int_to_ptr.vmem [resolvable:$true] %s192_s26 }
  0x3e   : > { %vm567_vm2 = vcmp.gt.f32.partialorder %v142_v7, 0.10277212  ;;  %v280_v16 = vld [vmem:[%s114_s24 + $0x4] ss:$8 sm:$0xf0]  ;;  %s178_s10 = scalar_lea.sflag [#allocation4], %s558_s21 }
  0x3f   : > { %v439_v18 = vmov 0.71720433   ;;  %v165_v20 = vor.u32 %v280_v16, %v279_v13  ;;  %v281_v21 = vld [vmem:[%s114_s24 + $0x3] ss:$8 sm:$0xf]  ;;  %s370_s2 = scalar_lea.vmem %s574_s26, 128 }
  0x40   : > { %v149_v19 = vsel %vm148_vm0, 0.22564113, %v439_v18  ;;  %v440_v22 = vmov 0.6483767   ;;  %vm161_vm4 = vcmp.gt.f32.partialorder %v160_v15, -1.0178403  ;;  %p371_p6 = scmp.ne.s32.totalorder %s574_s26, %s370_s2 }
  0x41   : > { %v155_v23 = vsel %vm154_vm1, 0.5075352, %v440_v22  ;;  %v282_v24 = vld [vmem:[%s114_s24 + $0x3] ss:$8 sm:$0xf0]  ;;  %p632_p10 = scmp.ne.s32.totalorder %s625_s18, 0 }
  0x42   : > { %vm166_vm3 = vcmp.gt.f32.partialorder %v165_v20, -0.38098702  ;;  %v171_v25 = vor.u32 %v282_v24, %v281_v21  ;;  %v441_v26 = vmov 0.34104764   ;;  %vm138_vm5 = vcmp.gt.f32.partialorder %v137_v17, -1.2212279 }
  0x43   : > { %v167_v27 = vsel %vm166_vm3, 0.2200911, %v441_v26  ;;  %v156_v28 = vsel %vm567_vm2, %v149_v19, %v155_v23  ;;  %v442_v29 = vmov 0.9024495   ;;  %p372_p11 = pnand %p371_p6, %p632_p10  ;;  %s443_s3 = smov [#allocation5]  }
  0x44   : > { %vm172_vm6 = vcmp.gt.f32.partialorder %v171_v25, -0.1767751  ;;  %s374_s4 = sshll.u32 %s443_s3, 4  ;;  %s375_s4 = int_to_ptr.vmem [resolvable:$false] %s374_s4 }
  0x45   : > { %v173_v30 = vsel %vm172_vm6, 0.91229284, %v442_v29  ;;  %p373_p12 = pneg %p372_p11  ;;  %s376_s5 = scalar_lea.vmem %s375_s4, 256 }
  0x46   : > { %v174_v31 = vsel %vm161_vm4, %v167_v27, %v173_v30  ;;  %p377_p4 = scmp.lt.s32.totalorder %s574_s26, %s375_s4  ;;  %p378_p9 = scmp.lt.s32.totalorder %s376_s5, %s370_s2 }
  0x47   : > { %v175_v32 = vsel %vm138_vm5, %v156_v28, %v174_v31 }
  0x48   : > { %176 = vst [vmem:[%s132_s17] sm:$0xff] %v175_v32  ;;  %p379_p1 = por %p378_p9, %p377_p4 }
  0x4a   : > { %p380_p3 = pnand %p379_p1, %p373_p12 }
  0x4c   : > { %383 = shalt.err (!%p380_p3)
}
  0x4d   : > { %s384_s11 = scalar_lea.hbm %s579_s30, 128  ;;  %s388_s16 = scalar_lea.hbm %s621_s1, 512 }
  0x4e   : > { %p385_p5 = scmp.ne.s32.totalorder %s579_s30, %s384_s11  ;;  %p389_p13 = scmp.lt.u32.totalorder %s579_s30, %s621_s1 }
  0x4f   : > { %p390_p0 = scmp.lt.u32.totalorder %s388_s16, %s384_s11  ;;  %p392_p6 = scmp.lt.u32.totalorder %s384_s11, %s579_s30 }
  0x50   : > { %p386_p7 = pnand %p385_p5, %p632_p10 }
  0x51   : > { %p391_p2 = por %p390_p0, %p389_p13 }
  0x52   : > { %p387_p8 = pneg %p386_p7 }
  0x53   : > { %p393_p11 = por %p392_p6, %p391_p2 }
  0x55   : > { %p394_p12 = pnand %p393_p11, %p387_p8 }
  0x57   : > { %397 = shalt.err (!%p394_p12)
}
  0x58   : > { %292 = dma.vmem_to_hbm [thread:$0]  (%p632_p10), %s574_s26, 128, %s579_s30, %s178_s10  }
  0x59 PF: > { %p303_p4 = scmp.ge.s32.totalorder %s436_s9, 2  ;;  %s204_s22 = sand.u32 1, %s424_s6  }
  0x5a   : > { %p633_p9 = scmp.ne.s32.totalorder %s626_s19, 0  ;;  %s205_s23 = scalar_lea.sflag [#allocation4], %s204_s22 }
  0x5c   : > { %p299_p1 = pnand %p303_p4, %p633_p9 }
  0x5e   : > { %419 = dma.done.wait (!%p299_p1), %s205_s23, 128  }
  0x5f   : > { %421 = vsyncadd (!%p299_p1), %s205_s23, 4294967168  ;;  %p14_p3 = scmp.ge.s32.totalorder %s479_s12, 6   ;;  %s634_s6 = smov %s428_s7 }
  0x60   : > { %s635_s7 = smov %s432_s8  ;;  %s636_s8 = smov %s491_s15 }
  0x61   : > { %s637_s9 = smov %s479_s12  ;;  %16 = sbr.rel (!%p14_p3) target bundleno = 5 (0x5), region = 75 }
  0x68   :  { %210 = vsyncpa [#allocation3], 1 }
  0x69   :  { %212 = vsyncpa [#allocation3 + $0x1], 1 }
  0x6a   :  { %213 = vsyncpa [#allocation4], 1 }
  0x6b   :  { %215 = vsyncpa [#allocation4 + $0x1], 1 }

</bundles_post_ra>
